<compile_context>
chip_gen: v7x
topology: tpu7x:2x2x1
jax: 0.10.0
libtpu: 0.0.40
codegen_flags: <defaults>
</compile_context>

<pallas_src>
import functools

import jax
import jax.numpy as jnp
from jax import lax
from jax.experimental import pallas as pl
from jax.experimental.pallas import tpu as pltpu


def _round_up(x, m):
    return -(-x // m) * m


def _softce_kernel(logits_ref, targets_ref, out_ref, *, total_px, tile_px, needs_mask):
    """One (batch-block, pixel-tile) grid step.

    logits_ref : (B, C, T) logits tile  (classes on sublanes, pixels on lanes)
    targets_ref: (B, 1, T) int8/int32 target classes
    out_ref    : (8, 128)  f32 partial NLL sum for this grid step (broadcast)
    """
    x = logits_ref[...].astype(jnp.float32)               # (B, C, T)
    tgt = targets_ref[...].astype(jnp.int32)              # (B, 1, T)

    # numerically-stable log-sum-exp over the class (sublane) axis
    m = jnp.max(x, axis=1, keepdims=True)                 # (B, 1, T)
    lse = m + jnp.log(jnp.sum(jnp.exp(x - m), axis=1, keepdims=True))

    # pick the target-class logit: single compare + where (no dynamic gather)
    cls = lax.broadcasted_iota(jnp.int32, x.shape, 1)      # (B, C, T)
    picked = jnp.sum(jnp.where(cls == tgt, x, 0.0), axis=1, keepdims=True)

    nll = lse - picked                                     # (B, 1, T)

    def _write(val):
        out_ref[...] = jnp.broadcast_to(val, out_ref.shape)

    if needs_mask:
        # Only the last pixel tile overhangs H*W; mask it there only, with a
        # select (not a multiply) so garbage/NaN in padded lanes never leaks.
        s = pl.program_id(1)
        last = pl.num_programs(1) - 1

        @pl.when(s == last)
        def _():
            pix = s * tile_px + lax.broadcasted_iota(jnp.int32, nll.shape, 2)
            _write(jnp.sum(jnp.where(pix < total_px, nll, 0.0)))

        @pl.when(s != last)
        def _():
            _write(jnp.sum(nll))
    else:
        _write(jnp.sum(nll))


def _vmem_budget_bytes():
    """(buffer budget, scoped vmem limit) — conservative for v7x (64 MiB/core)."""
    limit = 48 * 1024 * 1024
    try:
        kind = jax.devices()[0].device_kind.lower()
        if any(g in kind for g in ("v4", "v5", "v6")) and "7" not in kind:
            limit = 96 * 1024 * 1024          # pre-v7 parts have 128 MiB VMEM
    except Exception:
        pass
    budget = (limit * 7) // 8                 # headroom for compiler scratch/out bufs
    return budget, limit


def _choose_tiling(n, c, hw, itemsize, budget_bytes):
    """Pick (images-per-block, pixels-per-tile) from a full VMEM accounting."""
    c_pad = _round_up(max(c, 1), 8)
    hw_pad = _round_up(max(hw, 1), 128)
    # Per-pixel VMEM bytes per image in the block (double-buffered):
    #   logits : 2 * c_pad * itemsize     (sublane-padded)
    #   targets: 2 * 32                   ((.,1,T) padded to a full sublane tile)
    per_px = 2 * c_pad * itemsize + 2 * 32
    tile_px = max(128, (budget_bytes // per_px // 128) * 128)
    b_blk = 1
    if tile_px >= hw_pad:
        # Whole image fits in one tile -> block several images per grid step so
        # tiny spatial extents still move multi-MB steps.
        tile_px = hw_pad
        max_b = max(1, budget_bytes // (per_px * tile_px))
        for d in range(min(n, max_b), 0, -1):
            if n % d == 0:
                b_blk = d
                break
    return b_blk, tile_px


def soft_cross_entropy_loss(logits, targets):
    """Equivalent of SoftCrossEntropyLoss.forward: F.cross_entropy(logits, targets),
    integer class targets, mean reduction.

    logits : (N, C, H, W) float (f32 or bf16; accumulation is f32 in-kernel)
    targets: (N, H, W) int (or 5-D (N, 1, H, W, ...), squeezed like the module)
    """
    if targets.ndim == 5:
        targets = jnp.squeeze(targets, axis=1)
    if not jnp.issubdtype(targets.dtype, jnp.integer):
        raise TypeError(f"[CrossEntropy] Expected integer targets, got {targets.dtype}")

    n, c, h, w = logits.shape
    hw = h * w

    # Free, contiguous reshapes -- no HBM transpose or pad traffic.
    logits3 = logits.reshape(n, c, hw)
    tgt_dtype = jnp.int8 if c <= 127 else jnp.int32
    targets3 = targets.reshape(n, 1, hw).astype(tgt_dtype)

    itemsize = jnp.dtype(logits.dtype).itemsize
    budget, vmem_limit = _vmem_budget_bytes()
    b_blk, tile_px = _choose_tiling(n, c, hw, itemsize, budget)

    grid = (n // b_blk, pl.cdiv(hw, tile_px))
    needs_mask = (hw % tile_px) != 0

    kernel = functools.partial(
        _softce_kernel, total_px=hw, tile_px=tile_px, needs_mask=needs_mask)

    partials = pl.pallas_call(
        kernel,
        out_shape=jax.ShapeDtypeStruct((grid[0], grid[1], 8, 128), jnp.float32),
        grid_spec=pltpu.PrefetchScalarGridSpec(
            num_scalar_prefetch=0,
            grid=grid,
            in_specs=[
                pl.BlockSpec((b_blk, c, tile_px), lambda i, s: (i, 0, s)),
                pl.BlockSpec((b_blk, 1, tile_px), lambda i, s: (i, 0, s)),
            ],
            out_specs=pl.BlockSpec((None, None, 8, 128), lambda i, s: (i, s, 0, 0)),
        ),
        compiler_params=pltpu.CompilerParams(
            dimension_semantics=("parallel", "parallel"),
            vmem_limit_bytes=vmem_limit,
        ),
    )(logits3, targets3)

    # mean reduction over all N*H*W positions (F.cross_entropy default)
    return jnp.sum(partials[:, :, 0, 0]) / jnp.float32(n * hw)


def _reference(logits, targets):
    # pure-JAX reference of F.cross_entropy(logits, targets), mean reduction
    n, c, h, w = logits.shape
    x = jnp.transpose(logits, (0, 2, 3, 1)).reshape(-1, c).astype(jnp.float32)
    t = targets.reshape(-1)
    logp = jax.nn.log_softmax(x, axis=-1)
    return -jnp.mean(jnp.take_along_axis(logp, t[:, None], axis=-1))


if __name__ == "__main__":
    key = jax.random.PRNGKey(0)
    k1, k2 = jax.random.split(key)

    N, C, H, W = 2, 4, 16, 16
    logits = jax.random.normal(k1, (N, C, H, W), dtype=jnp.float32)
    targets = jax.random.randint(k2, (N, H, W), 0, C, dtype=jnp.int32)

    loss = soft_cross_entropy_loss(logits, targets)
    loss = jax.block_until_ready(loss)

    ref = _reference(logits, targets)
    assert jnp.allclose(loss, ref, atol=1e-5, rtol=1e-5), (loss, ref)

    print("KERNEL_OK")
</pallas_src>

<mosaic_0001>
module attributes {stable_mosaic.version = 11 : i64} {
  func.func @_softce_kernel(%arg0: i32, %arg1: i32, %arg2: memref<2x4x256xf32, #tpu.memory_space<vmem>>, %arg3: memref<2x1x256xi8, #tpu.memory_space<vmem>>, %arg4: memref<1x1x8x128xf32, #tpu.memory_space<vmem>>) attributes {dimension_semantics = [#tpu.dimension_semantics<parallel>, #tpu.dimension_semantics<parallel>], iteration_bounds = array<i64: 1, 1>, scalar_prefetch = 0 : i64, scratch_operands = 0 : i64, tpu.core_type = #tpu.core_type<tc>, window_params = [{transform_indices = @transform_0, window_bounds = array<i64: 2, 4, 256>}, {transform_indices = @transform_1, window_bounds = array<i64: 2, 1, 256>}, {transform_indices = @transform_2, window_bounds = array<i64: 1, 1, 8, 128>}]} {
    %c0 = arith.constant 0 : index
    %c0_0 = arith.constant 0 : index
    %c0_1 = arith.constant 0 : index
    %0 = vector.load %arg2[%c0, %c0_0, %c0_1] : memref<2x4x256xf32, #tpu.memory_space<vmem>>, vector<2x4x256xf32>
    %c0_2 = arith.constant 0 : index
    %c0_3 = arith.constant 0 : index
    %c0_4 = arith.constant 0 : index
    %1 = vector.load %arg3[%c0_2, %c0_3, %c0_4] : memref<2x1x256xi8, #tpu.memory_space<vmem>>, vector<2x1x256xi8>
    %2 = arith.extsi %1 : vector<2x1x256xi8> to vector<2x1x256xi32>
    %cst = arith.constant dense<0xFF800000> : vector<2x256xf32>
    %3 = vector.multi_reduction <maximumf>, %0, %cst [1] : vector<2x4x256xf32> to vector<2x256xf32>
    %4 = vector.shape_cast %3 : vector<2x256xf32> to vector<2x1x256xf32>
    %5 = vector.broadcast %4 : vector<2x1x256xf32> to vector<2x4x256xf32>
    %6 = arith.subf %0, %5 : vector<2x4x256xf32>
    %7 = math.exp %6 : vector<2x4x256xf32>
    %cst_5 = arith.constant dense<0.000000e+00> : vector<2x256xf32>
    %8 = vector.multi_reduction <add>, %7, %cst_5 [1] : vector<2x4x256xf32> to vector<2x256xf32>
    %9 = vector.shape_cast %8 : vector<2x256xf32> to vector<2x1x256xf32>
    %10 = math.log %9 : vector<2x1x256xf32>
    %11 = arith.addf %4, %10 : vector<2x1x256xf32>
    %12 = tpu.iota {dimensions = array<i32: 1>} : vector<2x4x256xi32>
    %13 = vector.broadcast %2 : vector<2x1x256xi32> to vector<2x4x256xi32>
    %14 = arith.cmpi eq, %12, %13 : vector<2x4x256xi32>
    %cst_6 = arith.constant 0.000000e+00 : f32
    %15 = vector.broadcast %cst_6 : f32 to vector<2x4x256xf32>
    %16 = arith.select %14, %0, %15 : vector<2x4x256xi1>, vector<2x4x256xf32>
    %cst_7 = arith.constant dense<0.000000e+00> : vector<2x256xf32>
    %17 = vector.multi_reduction <add>, %16, %cst_7 [1] : vector<2x4x256xf32> to vector<2x256xf32>
    %18 = vector.shape_cast %17 : vector<2x256xf32> to vector<2x1x256xf32>
    %19 = arith.subf %11, %18 : vector<2x1x256xf32>
    %20 = vector.shape_cast %19 : vector<2x1x256xf32> to vector<1x2x1x256xf32>
    %cst_8 = arith.constant dense<0.000000e+00> : vector<1xf32>
    %21 = vector.multi_reduction <add>, %20, %cst_8 [1, 2, 3] : vector<1x2x1x256xf32> to vector<1xf32>
    %22 = vector.shape_cast %21 : vector<1xf32> to vector<1x1x1x1xf32>
    %23 = vector.extract %22[0, 0, 0, 0] : f32 from vector<1x1x1x1xf32>
    %24 = vector.broadcast %23 : f32 to vector<8x128xf32>
    %c0_9 = arith.constant 0 : index
    %c0_10 = arith.constant 0 : index
    %c0_11 = arith.constant 0 : index
    %c0_12 = arith.constant 0 : index
    %25 = vector.load %arg4[%c0_9, %c0_10, %c0_11, %c0_12] : memref<1x1x8x128xf32, #tpu.memory_space<vmem>>, vector<1x1x8x128xf32>
    %26 = vector.shape_cast %25 : vector<1x1x8x128xf32> to vector<8x128xf32>
    %27 = vector.shape_cast %24 : vector<8x128xf32> to vector<1x1x8x128xf32>
    tpu.vector_store %arg4[%c0_9, %c0_10, %c0_11, %c0_12], %27 {strides = array<i32>} : memref<1x1x8x128xf32, #tpu.memory_space<vmem>>, vector<1x1x8x128xf32>,
    return
  }
  func.func @transform_0(%arg0: i32, %arg1: i32) -> (i32, i32, i32) {
    %c0_i32 = arith.constant 0 : i32
    %c0_i32_0 = arith.constant 0 : i32
    return %arg0, %c0_i32, %arg1 : i32, i32, i32
  }
  func.func @transform_1(%arg0: i32, %arg1: i32) -> (i32, i32, i32) {
    %c0_i32 = arith.constant 0 : i32
    %c0_i32_0 = arith.constant 0 : i32
    return %arg0, %c0_i32, %arg1 : i32, i32, i32
  }
  func.func @transform_2(%arg0: i32, %arg1: i32) -> (i32, i32, i32, i32) {
    %c0_i32 = arith.constant 0 : i32
    %c0_i32_0 = arith.constant 0 : i32
    %c0_i32_1 = arith.constant 0 : i32
    return %arg0, %arg1, %c0_i32, %c0_i32_0 : i32, i32, i32, i32
  }
}

</mosaic_0001>

<bundles_post_ra>
// kernel: tpu_custom_call.1
= control target key start
LH: loop header
LB: loop body
LE: loop exit
PB: predicated region body
PF: predicated region fallthrough
CT: control target
= control target key end

     0   :  { %7 = vsyncpa [#allocation3], 0  ;;  %s427_s0 = inlined_call_operand.hbm [shape: f32[2,4,256], index: 0, kind: input, shape index: {}]   ;;  %s428_s1 = inlined_call_operand.vmem [shape: s8[2,1,256], index: 1, kind: input, shape index: {}]   ;;  %s429_s2 = inlined_call_operand.hbm [shape: f32[1,1,8,128], index: 2, kind: output, shape index: {}]  }
   0x1   :  { %8 = vsyncpa [#allocation4], 0  ;;  %s307_s9 = smov [#allocation2]   ;;  %s259_s13 = scalar_lea.hbm %s427_s0, 256 }
   0x2   :  { %s14_s10 = sshll.u32 %s307_s9, 4  ;;  %p260_p0 = scmp.ne.s32.totalorder %s427_s0, %s259_s13  ;;  %s15_s10 = int_to_ptr.vmem [resolvable:$true] %s14_s10 }
   0x3   :  { %p263_p1 = scmp.lt.u32.totalorder %s259_s13, %s427_s0 }
   0x5   :  { %p265_p2 = pnand %p263_p1, %p260_p0 }
   0x7   :  { %268 = shalt.err (!%p265_p2)
}
   0x8   :  { %s269_s18 = scalar_lea.vmem %s15_s10, 256  ;;  %p274_p4 = scmp.lt.s32.totalorder %s15_s10, %s15_s10 }
   0x9   :  { %p270_p3 = scmp.ne.s32.totalorder %s15_s10, %s269_s18  ;;  %p275_p5 = scmp.lt.s32.totalorder %s269_s18, %s269_s18 }
   0xb   :  { %p276_p6 = por %p275_p5, %p274_p4 }
   0xd   :  { %p277_p7 = pnand %p276_p6, %p270_p3 }
   0xf   :  { %280 = shalt.err (!%p277_p7)
}
  0x10   :  { %s308_s19 = smov 128   ;;  %s309_s20 = smov 8  }
  0x11   :  { %20 = dma.hbm_to_vmem [thread:$0]  %s427_s0, 256, %s15_s10, [#allocation3], %s308_s19, %s308_s19, %s309_s20  }
  0x12   :  { %303 = dma.done.wait [#allocation3], 256  }
  0x13   :  { %304 = vsyncadd [#allocation3], 4294967040  ;;  %vm38_vm0 = vcmask 1043456   ;;  %v338_v0 = vld [vmem:[#allocation2] sm:$0xff]  ;;  %v340_v1 = vld [vmem:[#allocation2 + $0x8] sm:$0xff]  ;;  %v127_v20 = vlaneseq  ;;  %vm201_vm5 = vcmask 1040384  }
  0x14   :  { %v344_v2 = vcombine.high %v338_v0, %v338_v0  ;;  %v348_v3 = vcombine.high %v340_v1, %v340_v1  ;;  %v39_v4 = vsel %vm38_vm0, %v338_v0, -inf  ;;  %v53_v5 = vsel %vm38_vm0, %v340_v1, -inf  ;;  %v236_v30 = vld [vmem:[%s428_s1] sm:$0xf]   ;;  %s310_s1 = smov [#allocation5]  }
  0x15   :  { %v40_v6 = vrot.slane %v39_v4, 4  ;;  %v54_v8 = vrot.slane %v53_v5, 4  ;;  %v128_v29 = vshrl.u32 %v127_v20, 7  ;;  %v237_v35 = vunpack.c.0.s8 %v236_v30  ;;  %s226_s24 = sshll.u32 %s310_s1, 4  ;;  %s227_s24 = int_to_ptr.vmem [resolvable:$true] %s226_s24 }
  0x16   :  { %v46_v7 = vsel %vm38_vm0, %v344_v2, -inf  ;;  %v60_v9 = vsel %vm38_vm0, %v348_v3, -inf  ;;  %v238_v39 = vunpack.c.1.s8 %v236_v30  ;;  %s281_s26 = scalar_lea.vmem %s227_s24, 128  ;;  %p286_p9 = scmp.lt.s32.totalorder %s227_s24, %s227_s24 }
  0x17   :  { %v47_v10 = vrot.slane %v46_v7, 4  ;;  %v61_v11 = vrot.slane %v60_v9, 4  ;;  %v41_v12 = vmax.f32 %v39_v4, %v40_v6  ;;  %v55_v13 = vmax.f32 %v53_v5, %v54_v8  ;;  %p282_p8 = scmp.ne.s32.totalorder %s227_s24, %s281_s26  ;;  %p287_p10 = scmp.lt.s32.totalorder %s281_s26, %s281_s26 }
  0x18   :  { %v131_v38 = vsub.s32 0, %v128_v29  ;;  %v135_v42 = vsub.s32 4, %v128_v29 }
  0x19   :  { %v48_v14 = vmax.f32 %v46_v7, %v47_v10  ;;  %v62_v15 = vmax.f32 %v60_v9, %v61_v11  ;;  %v42_v16 = vrot.slane %v41_v12, 2  ;;  %v56_v17 = vrot.slane %v55_v13, 2  ;;  %p288_p11 = por %p287_p10, %p286_p9 }
  0x1a   :  { %v132_v45 = vrot.slane %v237_v35, %v131_v38  ;;  %v140_v46 = vrot.slane %v238_v39, %v131_v38  ;;  %v136_v47 = vrot.slane %v237_v35, %v135_v42  ;;  %v144_v48 = vrot.slane %v238_v39, %v135_v42 }
  0x1b   :  { %v49_v18 = vrot.slane %v48_v14, 2  ;;  %v63_v19 = vrot.slane %v62_v15, 2  ;;  %v43_v21 = vmax.f32 %v41_v12, %v42_v16  ;;  %v57_v22 = vmax.f32 %v55_v13, %v56_v17  ;;  %p289_p12 = pnand %p288_p11, %p282_p8 }
  0x1c   :  { %v148_v49 = vrot.slane %v132_v45, %v131_v38  ;;  %v156_v50 = vrot.slane %v140_v46, %v131_v38  ;;  %v152_v51 = vrot.slane %v136_v47, %v131_v38  ;;  %v160_v52 = vrot.slane %v144_v48, %v131_v38 }
  0x1d   :  { %v50_v23 = vmax.f32 %v48_v14, %v49_v18  ;;  %v64_v24 = vmax.f32 %v62_v15, %v63_v19  ;;  %v44_v25 = vrot.slane %v43_v21, 1  ;;  %v58_v26 = vrot.slane %v57_v22, 1 }
  0x1e   :  { %vm375_vm1 = vcmp.eq.s32.totalorder %v128_v29, %v148_v49  ;;  %vm379_vm2 = vcmp.eq.s32.totalorder %v128_v29, %v156_v50  ;;  %vm383_vm3 = vcmp.eq.s32.totalorder %v128_v29, %v152_v51  ;;  %vm387_vm4 = vcmp.eq.s32.totalorder %v128_v29, %v160_v52 }
  0x1f   :  { %v51_v27 = vrot.slane %v50_v23, 1  ;;  %v65_v28 = vrot.slane %v64_v24, 1  ;;  %v361_v31 = vmax.f32 %v43_v21, %v44_v25  ;;  %v363_v32 = vmax.f32 %v57_v22, %v58_v26 }
  0x20   :  { %v165_v57 = vsel %vm375_vm1, %v338_v0, 0.0  ;;  %v167_v59 = vsel %vm379_vm2, %v340_v1, 0.0  ;;  %v166_v63 = vsel %vm383_vm3, %v344_v2, 0.0  ;;  %v168_v4 = vsel %vm387_vm4, %v348_v3, 0.0 }
  0x21   :  { %v365_v33 = vmax.f32 %v50_v23, %v51_v27  ;;  %v367_v34 = vmax.f32 %v64_v24, %v65_v28  ;;  %v169_v7 = vsel %vm38_vm0, %v165_v57, 0.0  ;;  %v183_v9 = vsel %vm38_vm0, %v167_v59, 0.0 }
  0x22   :  { %v176_v2 = vsel %vm38_vm0, %v166_v63, 0.0  ;;  %v170_v3 = vrot.slane %v169_v7, 4  ;;  %v190_v15 = vsel %vm38_vm0, %v168_v4, 0.0  ;;  %v184_v18 = vrot.slane %v183_v9, 4 }
  0x23   :  { %v71_v36 = vcombine.low %v361_v31, %v365_v33  ;;  %v72_v37 = vcombine.low %v363_v32, %v367_v34  ;;  %v177_v21 = vrot.slane %v176_v2, 4  ;;  %v191_v24 = vrot.slane %v190_v15, 4 }
  0x24   :  { %v171_v27 = vadd.f32 %v170_v3, %v169_v7  ;;  %v185_v30 = vadd.f32 %v184_v18, %v183_v9 }
  0x25   :  { %v75_v40 = vsub.f32 %v338_v0, %v71_v36  ;;  %v76_v41 = vsub.f32 %v340_v1, %v72_v37  ;;  %v178_v37 = vadd.f32 %v177_v21, %v176_v2 }
  0x26   :  { %v186_v45 = vrot.slane %v185_v30, 2 }
  0x27   :  { %v77_v43 = vmul.f32 1.442695, %v75_v40  ;;  %v79_v44 = vmul.f32 1.442695, %v76_v41  ;;  %v192_v40 = vadd.f32 %v191_v24, %v190_v15  ;;  %v179_v47 = vrot.slane %v178_v37, 2 }
  0x28   :  { %v187_v50 = vadd.f32 %v186_v45, %v185_v30 }
  0x29   :  { %247 = vpow2.f32 %v77_v43  ;;  %v172_v43 = vrot.slane %v171_v27, 2  ;;  %v193_v48 = vrot.slane %v192_v40, 2  ;;  %v180_v51 = vadd.f32 %v179_v47, %v178_v37 }
  0x2a   :  { %249 = vpow2.f32 %v79_v44  ;;  %v188_v54 = vrot.slane %v187_v50, 1 }
  0x2b   :  { %v173_v49 = vadd.f32 %v172_v43, %v171_v27  ;;  %v194_v52 = vadd.f32 %v193_v48, %v192_v40  ;;  %v181_v55 = vrot.slane %v180_v51, 1 }
  0x2c   :  { %v189_v63 = vadd.f32 %v188_v54, %v187_v50 }
  0x2d   :  { %v174_v53 = vrot.slane %v173_v49, 1  ;;  %v195_v57 = vrot.slane %v194_v52, 1 }
  0x33   :  { %v248_v58 = vpop.eup %247 }
  0x34   :  { %v250_v60 = vpop.eup %249  ;;  %v83_v61 = vcombine.high %v248_v58, %v248_v58  ;;  %v87_v62 = vsel %vm38_vm0, %v248_v58, 0.0 }
  0x35   :  { %v84_v5 = vcombine.high %v250_v60, %v250_v60  ;;  %v88_v6 = vrot.slane %v87_v62, 4  ;;  %v101_v0 = vsel %vm38_vm0, %v250_v60, 0.0  ;;  %v175_v60 = vadd.f32 %v174_v53, %v173_v49 }
  0x36   :  { %v94_v1 = vsel %vm38_vm0, %v83_v61, 0.0  ;;  %v102_v8 = vrot.slane %v101_v0, 4 }
  0x37   :  { %v89_v10 = vadd.f32 %v88_v6, %v87_v62  ;;  %v95_v11 = vrot.slane %v94_v1, 4  ;;  %v108_v12 = vsel %vm38_vm0, %v84_v5, 0.0 }
  0x38   :  { %v103_v13 = vadd.f32 %v102_v8, %v101_v0  ;;  %v109_v14 = vrot.slane %v108_v12, 4  ;;  %v182_v0 = vadd.f32 %v181_v55, %v180_v51  ;;  %v196_v8 = vadd.f32 %v195_v57, %v194_v52 }
  0x39   :  { %v90_v16 = vrot.slane %v89_v10, 2  ;;  %v96_v17 = vadd.f32 %v95_v11, %v94_v1 }
  0x3a   :  { %v104_v19 = vrot.slane %v103_v13, 2  ;;  %v110_v20 = vadd.f32 %v109_v14, %v108_v12 }
  0x3b   :  { %v91_v22 = vadd.f32 %v90_v16, %v89_v10  ;;  %v97_v23 = vrot.slane %v96_v17, 2 }
  0x3c   :  { %v105_v25 = vadd.f32 %v104_v19, %v103_v13  ;;  %v111_v26 = vrot.slane %v110_v20, 2 }
  0x3d   :  { %v92_v28 = vrot.slane %v91_v22, 1  ;;  %v98_v29 = vadd.f32 %v97_v23, %v96_v17 }
  0x3e   :  { %v106_v35 = vrot.slane %v105_v25, 1  ;;  %v112_v36 = vadd.f32 %v111_v26, %v110_v20 }
  0x3f   :  { %v93_v38 = vadd.f32 %v92_v28, %v91_v22  ;;  %v99_v39 = vrot.slane %v98_v29, 1 }
  0x40   :  { %v107_v41 = vadd.f32 %v106_v35, %v105_v25  ;;  %v113_v42 = vrot.slane %v112_v36, 1 }
  0x41   :  { %v100_v44 = vadd.f32 %v99_v39, %v98_v29  ;;  %251 = vlog2.f32 %v93_v38 }
  0x42   :  { %v114_v46 = vadd.f32 %v113_v42, %v112_v36  ;;  %253 = vlog2.f32 %v107_v41 }
  0x43   :  { %255 = vlog2.f32 %v100_v44 }
  0x44   :  { %257 = vlog2.f32 %v114_v46 }
  0x4b   :  { %v252_v56 = vpop.eup %251 }
  0x4c   :  { %v254_v58 = vpop.eup %253  ;;  %v116_v59 = vmul.f32 0.6931472, %v252_v56 }
  0x4d   :  { %v256_v61 = vpop.eup %255  ;;  %v120_v62 = vmul.f32 0.6931472, %v254_v58 }
  0x4e   :  { %v258_v4 = vpop.eup %257  ;;  %v118_v5 = vmul.f32 0.6931472, %v256_v61  ;;  %v123_v6 = vadd.f32 %v116_v59, %v361_v31 }
  0x4f   :  { %v122_v7 = vmul.f32 0.6931472, %v258_v4  ;;  %v125_v1 = vadd.f32 %v120_v62, %v363_v32 }
  0x50   :  { %v124_v9 = vadd.f32 %v118_v5, %v365_v33  ;;  %v197_v10 = vsub.f32 %v123_v6, %v175_v60 }
  0x51   :  { %v126_v11 = vadd.f32 %v122_v7, %v367_v34  ;;  %v199_v12 = vsub.f32 %v125_v1, %v189_v63 }
  0x52   :  { %v198_v2 = vsub.f32 %v124_v9, %v182_v0  ;;  %v202_v13 = vsel %vm201_vm5, %v197_v10, 0.0 }
  0x53   :  { %v200_v14 = vsub.f32 %v126_v11, %v196_v8  ;;  %v205_v15 = vsel %vm201_vm5, %v199_v12, 0.0 }
  0x54   :  { %v203_v3 = vsel %vm201_vm5, %v198_v2, 0.0 }
  0x55   :  { %v204_v16 = vadd.f32 %v203_v3, %v202_v13  ;;  %v207_v17 = vsel %vm201_vm5, %v200_v14, 0.0 }
  0x57   :  { %v206_v31 = vadd.f32 %v205_v15, %v204_v16 }
  0x59   :  { %v208_v18 = vadd.f32 %v207_v17, %v206_v31 }
  0x5b   :  { %209 = vadd.xlane.f32.xlu0 %v208_v18 }
  0xe8   :  { %v210_v19 = vpop.xlane.xlu0 %209 }
  0xe9   :  { %v211_v32 = vrot.slane %v210_v19, 4 }
  0xeb   :  { %v212_v20 = vadd.f32 %v211_v32, %v210_v19 }
  0xed   :  { %v213_v21 = vrot.slane %v212_v20, 2 }
  0xef   :  { %v214_v22 = vadd.f32 %v213_v21, %v212_v20 }
  0xf1   :  { %v215_v33 = vrot.slane %v214_v22, 1 }
  0xf3   :  { %v216_v23 = vadd.f32 %v215_v33, %v214_v22 }
  0xf5   :  { %239 = vpush %v216_v23 }
 0x126   :  { %s240_s25 = spop %239 }
 0x127   :  { %v218_v34 = vstv %s240_s25 }
 0x128   :  { %219 = vst [vmem:[#allocation5] sm:$0xff] %v218_v34 }
 0x129   :  { %292 = shalt.err (!%p289_p12)
}
 0x12a   :  { %s293_s29 = scalar_lea.hbm %s429_s2, 128 }
 0x12b   :  { %p294_p13 = scmp.ne.s32.totalorder %s429_s2, %s293_s29  ;;  %p297_p0 = scmp.lt.u32.totalorder %s293_s29, %s429_s2 }
 0x12d   :  { %p299_p1 = pnand %p297_p0, %p294_p13 }
 0x12f   :  { %302 = shalt.err (!%p299_p1)
}
 0x130   :  { %229 = dma.vmem_to_hbm [thread:$0]  %s227_s24, 128, %s429_s2, [#allocation4]  }
 0x131   :  { %305 = dma.done.wait [#allocation4], 128  }
 0x132   :  { %306 = vsyncadd [#allocation4], 4294967168 }
 0x133   :  { %233 = vsyncpa [#allocation3], 1 }
 0x134   :  { %234 = vsyncpa [#allocation4], 1 }

</bundles_post_ra>
